<compile_context>
chip_gen: v5e
topology: v5e:2x2
jax: 0.10.0
libtpu: 0.0.40
codegen_flags: <defaults>
</compile_context>

<pallas_src>
import jax
import jax.numpy as jnp
import numpy as np
from jax.experimental import pallas as pl
from jax.experimental.pallas import tpu as pltpu


def _round_up(x, m):
    return ((x + m - 1) // m) * m


# ---------------------------------------------------------------------------
# Pallas kernel: fused SEA forward
#   [e_o; e_n] = W2 @ relu(W1 @ [obs; next_obs] + b1) + b2   (shared encoder)
#   pred       = <e_o, wp1> + <e_n, wp2> + <action, wpa> + bp
# ---------------------------------------------------------------------------
def sea_forward_kernel(x_ref, act_ref,
                       w1_ref, b1_ref, w2_ref, b2_ref,
                       wp1_ref, wp2_ref, wpa_ref, bp_ref,
                       embed_ref, pred_ref):
    bm = embed_ref.shape[0]

    # Shared 2-layer encoder over the stacked [obs; next_obs] tile:
    # one MXU pass per layer (bf16 inputs, f32 accumulation).
    h = jnp.dot(x_ref[...], w1_ref[...],
                preferred_element_type=jnp.float32) + b1_ref[...]
    h = jnp.maximum(h, 0.0).astype(jnp.bfloat16)
    e = jnp.dot(h, w2_ref[...],
                preferred_element_type=jnp.float32) + b2_ref[...]   # (2*bm, E) f32

    e_o = e[:bm]          # embeddings of obs       (rows 0..bm)
    e_n = e[bm:]          # embeddings of next_obs  (rows bm..2bm)

    # Prediction head: three N=1 "matmuls" done as VPU multiply + XLU lane
    # reduction, keeping the MXU free for the encoder.
    pred = (jnp.sum(e_o * wp1_ref[...], axis=-1, keepdims=True)
            + jnp.sum(e_n * wp2_ref[...], axis=-1, keepdims=True)
            + jnp.sum(act_ref[...] * wpa_ref[...], axis=-1, keepdims=True)
            + bp_ref[0])                                             # (bm, 1)

    embed_ref[...] = e_o
    # Lane-dense store: broadcast the width-1 logit across 128 lanes; the
    # wrapper slices [:, :1].  Avoids masked vst on every grid step.
    pred_ref[...] = jnp.broadcast_to(pred, (bm, 128))


def sea_forward(obs, next_obs, action, params, *, block_m=256):
    """Pallas wrapper: large batch tiles, weights stay resident in VMEM."""
    B, D = obs.shape
    A = action.shape[-1]
    H = params["w1"].shape[1]
    E = params["w2"].shape[1]

    # Pick a batch tile (multiple of 8 sublanes), pad ragged batches.
    bm = min(_round_up(block_m, 8), _round_up(B, 8))
    Bp = _round_up(B, bm)
    G = Bp // bm
    pad = Bp - B
    if pad:
        pad_rows = lambda a: jnp.pad(a, ((0, pad), (0, 0)))
        obs, next_obs, action = map(pad_rows, (obs, next_obs, action))

    # Stack obs / next_obs so the shared encoder runs once per tile:
    # within each grid tile, rows [0, bm) = obs, rows [bm, 2bm) = next_obs.
    x = jnp.concatenate(
        [obs.reshape(G, bm, D), next_obs.reshape(G, bm, D)], axis=1
    ).reshape(G * 2 * bm, D).astype(jnp.bfloat16)

    w1 = params["w1"].astype(jnp.bfloat16)
    w2 = params["w2"].astype(jnp.bfloat16)
    wp1 = params["wp1"].reshape(1, E)
    wp2 = params["wp2"].reshape(1, E)
    wpa = params["wpa"].reshape(1, A)
    bp = params["bp"].reshape(1).astype(jnp.float32)

    full = lambda shape: pl.BlockSpec(shape, lambda i: (0, 0))

    in_specs = [
        pl.BlockSpec((2 * bm, D), lambda i: (i, 0)),        # stacked obs/nobs (bf16)
        pl.BlockSpec((bm, A), lambda i: (i, 0)),            # action (f32)
        full((D, H)),                                       # w1 (bf16)
        full((1, H)),                                       # b1 (f32)
        full((H, E)),                                       # w2 (bf16)
        full((1, E)),                                       # b2 (f32)
        full((1, E)),                                       # wp1 row (f32)
        full((1, E)),                                       # wp2 row (f32)
        full((1, A)),                                       # wpa row (f32)
        pl.BlockSpec(memory_space=pltpu.MemorySpace.SMEM),  # bp scalar
    ]
    out_specs = (
        pl.BlockSpec((bm, E), lambda i: (i, 0)),            # embeds
        pl.BlockSpec((bm, 128), lambda i: (i, 0)),          # lane-dense preds
    )
    out_shapes = (
        jax.ShapeDtypeStruct((Bp, E), jnp.float32),
        jax.ShapeDtypeStruct((Bp, 128), jnp.float32),
    )

    embeds, preds128 = pl.pallas_call(
        sea_forward_kernel,
        grid=(G,),
        in_specs=in_specs,
        out_specs=out_specs,
        out_shape=out_shapes,
        compiler_params=pltpu.CompilerParams(
            dimension_semantics=("parallel",)),
    )(x, action.astype(jnp.float32),
      w1, params["b1"], w2, params["b2"],
      wp1, wp2, wpa, bp)

    return embeds[:B], preds128[:B, :1]


# ---------------------------------------------------------------------------
# Pure-JAX reference mirroring the kernel's bf16 input rounding (products are
# exact in f32, so results match up to accumulation order).
# ---------------------------------------------------------------------------
def sea_forward_ref(obs, next_obs, action, p):
    bf = lambda a: a.astype(jnp.bfloat16).astype(jnp.float32)
    w1, w2 = bf(p["w1"]), bf(p["w2"])

    def enc(x):
        h = jnp.maximum(bf(x) @ w1 + p["b1"], 0.0)
        return bf(h) @ w2 + p["b2"]

    e_o, e_n = enc(obs), enc(next_obs)
    pred = (jnp.sum(e_o * p["wp1"].reshape(1, -1), axis=-1, keepdims=True)
            + jnp.sum(e_n * p["wp2"].reshape(1, -1), axis=-1, keepdims=True)
            + jnp.sum(action * p["wpa"].reshape(1, -1), axis=-1, keepdims=True)
            + p["bp"])
    return e_o, pred


def init_params(key, obs_dim, num_actions, hidden, embed_dim):
    ks = jax.random.split(key, 7)
    s = lambda k, shape, fan_in: (
        jax.random.normal(k, shape, jnp.float32) / np.sqrt(fan_in))
    return {
        "w1": s(ks[0], (obs_dim, hidden), obs_dim),
        "b1": jnp.zeros((1, hidden), jnp.float32),
        "w2": s(ks[1], (hidden, embed_dim), hidden),
        "b2": jnp.zeros((1, embed_dim), jnp.float32),
        "wp1": s(ks[2], (embed_dim, 1), embed_dim),
        "wp2": s(ks[3], (embed_dim, 1), embed_dim),
        "wpa": s(ks[4], (num_actions, 1), num_actions),
        "bp": jnp.zeros((1, 1), jnp.float32),
    }


# TODO(synk): SEATrain's training-side code (_calc_contrast_loss determinant
# loss, Adam step, backward, dist.all_reduce, schedulers, tensorboard writer)
# is host / optimizer machinery outside the module's forward pass and is not
# kernelized.

if __name__ == "__main__":
    B = 256          # minibatch of (actor, step) samples
    OBS_DIM = 32     # flat state_shape
    NUM_ACTIONS = 8
    HIDDEN = 64
    EMBED = 32

    key = jax.random.PRNGKey(0)
    k_obs, k_nobs, k_act, k_par = jax.random.split(key, 4)

    obs = jax.random.normal(k_obs, (B, OBS_DIM), jnp.float32)
    next_obs = jax.random.normal(k_nobs, (B, OBS_DIM), jnp.float32)
    # one-hot discrete actions, as produced by the rollout buffer
    act_ids = jax.random.randint(k_act, (B,), 0, NUM_ACTIONS)
    action = jax.nn.one_hot(act_ids, NUM_ACTIONS, dtype=jnp.float32)

    params = init_params(k_par, OBS_DIM, NUM_ACTIONS, HIDDEN, EMBED)

    # block_m=128 -> grid of 2 parallel steps (keeps both v7x TCs busy).
    embeds, preds = sea_forward(obs, next_obs, action, params, block_m=128)
    jax.block_until_ready((embeds, preds))

    # correctness check vs pure-JAX reference
    ref_e, ref_p = sea_forward_ref(obs, next_obs, action, params)
    np.testing.assert_allclose(np.asarray(embeds), np.asarray(ref_e),
                               rtol=1e-4, atol=1e-4)
    np.testing.assert_allclose(np.asarray(preds), np.asarray(ref_p),
                               rtol=1e-4, atol=1e-4)

    print("KERNEL_OK")
</pallas_src>

<mosaic_0001>
module attributes {stable_mosaic.version = 11 : i64} {
  func.func @sea_forward_kernel(%arg0: i32, %arg1: memref<256x32xbf16, #tpu.memory_space<vmem>>, %arg2: memref<128x8xf32, #tpu.memory_space<vmem>>, %arg3: memref<32x64xbf16, #tpu.memory_space<vmem>>, %arg4: memref<1x64xf32, #tpu.memory_space<vmem>>, %arg5: memref<64x32xbf16, #tpu.memory_space<vmem>>, %arg6: memref<1x32xf32, #tpu.memory_space<vmem>>, %arg7: memref<1x32xf32, #tpu.memory_space<vmem>>, %arg8: memref<1x32xf32, #tpu.memory_space<vmem>>, %arg9: memref<1x8xf32, #tpu.memory_space<vmem>>, %arg10: memref<1xf32, #tpu.memory_space<smem>>, %arg11: memref<128x32xf32, #tpu.memory_space<vmem>>, %arg12: memref<128x128xf32, #tpu.memory_space<vmem>>) attributes {dimension_semantics = [#tpu.dimension_semantics<parallel>], iteration_bounds = array<i64: 2>, scalar_prefetch = 0 : i64, scratch_operands = 0 : i64, tpu.core_type = #tpu.core_type<tc>, window_params = [{transform_indices = @transform_0, window_bounds = array<i64: 256, 32>}, {transform_indices = @transform_1, window_bounds = array<i64: 128, 8>}, {pipeline_mode = #tpu.pipeline_mode<synchronous>, transform_indices = @transform_2, window_bounds = array<i64: 32, 64>}, {pipeline_mode = #tpu.pipeline_mode<synchronous>, transform_indices = @transform_3, window_bounds = array<i64: 1, 64>}, {pipeline_mode = #tpu.pipeline_mode<synchronous>, transform_indices = @transform_4, window_bounds = array<i64: 64, 32>}, {pipeline_mode = #tpu.pipeline_mode<synchronous>, transform_indices = @transform_5, window_bounds = array<i64: 1, 32>}, {pipeline_mode = #tpu.pipeline_mode<synchronous>, transform_indices = @transform_6, window_bounds = array<i64: 1, 32>}, {pipeline_mode = #tpu.pipeline_mode<synchronous>, transform_indices = @transform_7, window_bounds = array<i64: 1, 32>}, {pipeline_mode = #tpu.pipeline_mode<synchronous>, transform_indices = @transform_8, window_bounds = array<i64: 1, 8>}, {transform_indices = @transform_9, window_bounds = array<i64: 1>}, {transform_indices = @transform_10, window_bounds = array<i64: 128, 32>}, {transform_indices = @transform_11, window_bounds = array<i64: 128, 128>}]} {
    %c0 = arith.constant 0 : index
    %c0_0 = arith.constant 0 : index
    %0 = vector.load %arg1[%c0, %c0_0] : memref<256x32xbf16, #tpu.memory_space<vmem>>, vector<256x32xbf16>
    %c0_1 = arith.constant 0 : index
    %c0_2 = arith.constant 0 : index
    %1 = vector.load %arg3[%c0_1, %c0_2] : memref<32x64xbf16, #tpu.memory_space<vmem>>, vector<32x64xbf16>
    %cst = arith.constant dense<0.000000e+00> : vector<256x64xf32>
    %2 = tpu.matmul %0, %1, %cst {dimension_numbers = #tpu.dot_dimension_numbers<[1], [0], [0], [1], [0, 0, 1, 1], [], []>} : vector<256x32xbf16>, vector<32x64xbf16>, vector<256x64xf32> -> vector<256x64xf32>
    %c0_3 = arith.constant 0 : index
    %c0_4 = arith.constant 0 : index
    %3 = vector.load %arg4[%c0_3, %c0_4] : memref<1x64xf32, #tpu.memory_space<vmem>>, vector<1x64xf32>
    %4 = vector.broadcast %3 : vector<1x64xf32> to vector<256x64xf32>
    %5 = arith.addf %2, %4 : vector<256x64xf32>
    %cst_5 = arith.constant 0.000000e+00 : f32
    %6 = vector.broadcast %cst_5 : f32 to vector<256x64xf32>
    %7 = arith.maximumf %5, %6 : vector<256x64xf32>
    %8 = arith.truncf %7 : vector<256x64xf32> to vector<256x64xbf16>
    %c0_6 = arith.constant 0 : index
    %c0_7 = arith.constant 0 : index
    %9 = vector.load %arg5[%c0_6, %c0_7] : memref<64x32xbf16, #tpu.memory_space<vmem>>, vector<64x32xbf16>
    %cst_8 = arith.constant dense<0.000000e+00> : vector<256x32xf32>
    %10 = tpu.matmul %8, %9, %cst_8 {dimension_numbers = #tpu.dot_dimension_numbers<[1], [0], [0], [1], [0, 0, 1, 1], [], []>} : vector<256x64xbf16>, vector<64x32xbf16>, vector<256x32xf32> -> vector<256x32xf32>
    %c0_9 = arith.constant 0 : index
    %c0_10 = arith.constant 0 : index
    %11 = vector.load %arg6[%c0_9, %c0_10] : memref<1x32xf32, #tpu.memory_space<vmem>>, vector<1x32xf32>
    %12 = vector.broadcast %11 : vector<1x32xf32> to vector<256x32xf32>
    %13 = arith.addf %10, %12 : vector<256x32xf32>
    %14 = vector.extract_strided_slice %13 {offsets = [0, 0], sizes = [128, 32], strides = [1, 1]} : vector<256x32xf32> to vector<128x32xf32>
    %15 = vector.extract_strided_slice %13 {offsets = [128, 0], sizes = [128, 32], strides = [1, 1]} : vector<256x32xf32> to vector<128x32xf32>
    %c0_11 = arith.constant 0 : index
    %c0_12 = arith.constant 0 : index
    %16 = vector.load %arg7[%c0_11, %c0_12] : memref<1x32xf32, #tpu.memory_space<vmem>>, vector<1x32xf32>
    %17 = vector.broadcast %16 : vector<1x32xf32> to vector<128x32xf32>
    %18 = arith.mulf %14, %17 : vector<128x32xf32>
    %cst_13 = arith.constant dense<0.000000e+00> : vector<128xf32>
    %19 = vector.multi_reduction <add>, %18, %cst_13 [1] : vector<128x32xf32> to vector<128xf32>
    %20 = vector.shape_cast %19 : vector<128xf32> to vector<128x1xf32>
    %c0_14 = arith.constant 0 : index
    %c0_15 = arith.constant 0 : index
    %21 = vector.load %arg8[%c0_14, %c0_15] : memref<1x32xf32, #tpu.memory_space<vmem>>, vector<1x32xf32>
    %22 = vector.broadcast %21 : vector<1x32xf32> to vector<128x32xf32>
    %23 = arith.mulf %15, %22 : vector<128x32xf32>
    %cst_16 = arith.constant dense<0.000000e+00> : vector<128xf32>
    %24 = vector.multi_reduction <add>, %23, %cst_16 [1] : vector<128x32xf32> to vector<128xf32>
    %25 = vector.shape_cast %24 : vector<128xf32> to vector<128x1xf32>
    %26 = arith.addf %20, %25 : vector<128x1xf32>
    %c0_17 = arith.constant 0 : index
    %c0_18 = arith.constant 0 : index
    %27 = vector.load %arg2[%c0_17, %c0_18] : memref<128x8xf32, #tpu.memory_space<vmem>>, vector<128x8xf32>
    %c0_19 = arith.constant 0 : index
    %c0_20 = arith.constant 0 : index
    %28 = vector.load %arg9[%c0_19, %c0_20] : memref<1x8xf32, #tpu.memory_space<vmem>>, vector<1x8xf32>
    %29 = vector.broadcast %28 : vector<1x8xf32> to vector<128x8xf32>
    %30 = arith.mulf %27, %29 : vector<128x8xf32>
    %cst_21 = arith.constant dense<0.000000e+00> : vector<128xf32>
    %31 = vector.multi_reduction <add>, %30, %cst_21 [1] : vector<128x8xf32> to vector<128xf32>
    %32 = vector.shape_cast %31 : vector<128xf32> to vector<128x1xf32>
    %33 = arith.addf %26, %32 : vector<128x1xf32>
    %c0_22 = arith.constant 0 : index
    %34 = memref.load %arg10[%c0_22] : memref<1xf32, #tpu.memory_space<smem>>
    %35 = vector.broadcast %34 : f32 to vector<128x1xf32>
    %36 = arith.addf %33, %35 : vector<128x1xf32>
    %c0_23 = arith.constant 0 : index
    %c0_24 = arith.constant 0 : index
    %37 = vector.load %arg11[%c0_23, %c0_24] : memref<128x32xf32, #tpu.memory_space<vmem>>, vector<128x32xf32>
    tpu.vector_store %arg11[%c0_23, %c0_24], %14 {strides = array<i32>} : memref<128x32xf32, #tpu.memory_space<vmem>>, vector<128x32xf32>,
    %38 = vector.shape_cast %36 : vector<128x1xf32> to vector<128x1xf32>
    %39 = vector.broadcast %38 : vector<128x1xf32> to vector<128x128xf32>
    %c0_25 = arith.constant 0 : index
    %c0_26 = arith.constant 0 : index
    %40 = vector.load %arg12[%c0_25, %c0_26] : memref<128x128xf32, #tpu.memory_space<vmem>>, vector<128x128xf32>
    tpu.vector_store %arg12[%c0_25, %c0_26], %39 {strides = array<i32>} : memref<128x128xf32, #tpu.memory_space<vmem>>, vector<128x128xf32>,
    return
  }
  func.func @transform_0(%arg0: i32) -> (i32, i32) {
    %c0_i32 = arith.constant 0 : i32
    %c0_i32_0 = arith.constant 0 : i32
    return %arg0, %c0_i32 : i32, i32
  }
  func.func @transform_1(%arg0: i32) -> (i32, i32) {
    %c0_i32 = arith.constant 0 : i32
    %c0_i32_0 = arith.constant 0 : i32
    return %arg0, %c0_i32 : i32, i32
  }
  func.func @transform_2(%arg0: i32) -> (i32, i32) {
    %c0_i32 = arith.constant 0 : i32
    %c0_i32_0 = arith.constant 0 : i32
    %c0_i32_1 = arith.constant 0 : i32
    return %c0_i32, %c0_i32_0 : i32, i32
  }
  func.func @transform_3(%arg0: i32) -> (i32, i32) {
    %c0_i32 = arith.constant 0 : i32
    %c0_i32_0 = arith.constant 0 : i32
    %c0_i32_1 = arith.constant 0 : i32
    return %c0_i32, %c0_i32_0 : i32, i32
  }
  func.func @transform_4(%arg0: i32) -> (i32, i32) {
    %c0_i32 = arith.constant 0 : i32
    %c0_i32_0 = arith.constant 0 : i32
    %c0_i32_1 = arith.constant 0 : i32
    return %c0_i32, %c0_i32_0 : i32, i32
  }
  func.func @transform_5(%arg0: i32) -> (i32, i32) {
    %c0_i32 = arith.constant 0 : i32
    %c0_i32_0 = arith.constant 0 : i32
    %c0_i32_1 = arith.constant 0 : i32
    return %c0_i32, %c0_i32_0 : i32, i32
  }
  func.func @transform_6(%arg0: i32) -> (i32, i32) {
    %c0_i32 = arith.constant 0 : i32
    %c0_i32_0 = arith.constant 0 : i32
    %c0_i32_1 = arith.constant 0 : i32
    return %c0_i32, %c0_i32_0 : i32, i32
  }
  func.func @transform_7(%arg0: i32) -> (i32, i32) {
    %c0_i32 = arith.constant 0 : i32
    %c0_i32_0 = arith.constant 0 : i32
    %c0_i32_1 = arith.constant 0 : i32
    return %c0_i32, %c0_i32_0 : i32, i32
  }
  func.func @transform_8(%arg0: i32) -> (i32, i32) {
    %c0_i32 = arith.constant 0 : i32
    %c0_i32_0 = arith.constant 0 : i32
    %c0_i32_1 = arith.constant 0 : i32
    return %c0_i32, %c0_i32_0 : i32, i32
  }
  func.func @transform_9(%arg0: i32) -> i32 {
    %c0_i32 = arith.constant 0 : i32
    %c0_i32_0 = arith.constant 0 : i32
    return %c0_i32 : i32
  }
  func.func @transform_10(%arg0: i32) -> (i32, i32) {
    %c0_i32 = arith.constant 0 : i32
    %c0_i32_0 = arith.constant 0 : i32
    return %arg0, %c0_i32 : i32, i32
  }
  func.func @transform_11(%arg0: i32) -> (i32, i32) {
    %c0_i32 = arith.constant 0 : i32
    %c0_i32_0 = arith.constant 0 : i32
    return %arg0, %c0_i32 : i32, i32
  }
}

</mosaic_0001>

<bundles_post_ra>
// kernel: tpu_custom_call.1
= control target key start
LH: loop header
LB: loop body
LE: loop exit
PB: predicated region body
PF: predicated region fallthrough
CT: control target
= control target key end

     0   :  { %s2210_s0 = inlined_call_operand.vmem [shape: bf16[512,32], index: 0, kind: input, shape index: {}]   ;;  %s2211_s1 = inlined_call_operand.vmem [shape: f32[256,8], index: 1, kind: input, shape index: {}]   ;;  %s2212_s2 = inlined_call_operand.vmem [shape: bf16[32,64], index: 2, kind: input, shape index: {}]   ;;  %s2213_s3 = inlined_call_operand.vmem [shape: f32[1,64], index: 3, kind: input, shape index: {}]   ;;  %s2214_s4 = inlined_call_operand.vmem [shape: bf16[64,32], index: 4, kind: input, shape index: {}]   ;;  %s2215_s5 = inlined_call_operand.vmem [shape: f32[1,32], index: 5, kind: input, shape index: {}]   ;;  %s2216_s6 = inlined_call_operand.vmem [shape: f32[1,32], index: 6, kind: input, shape index: {}]   ;;  %s2217_s7 = inlined_call_operand.vmem [shape: f32[1,32], index: 7, kind: input, shape index: {}]   ;;  %s2218_s8 = inlined_call_operand.vmem [shape: f32[1,8], index: 8, kind: input, shape index: {}]   ;;  %s2219_s9 = inlined_call_operand.<no memory space> [shape: f32[1], index: 9, kind: input, shape index: {}]   ;;  %s2220_s10 = inlined_call_operand.vmem [shape: f32[256,32], index: 10, kind: output, shape index: {0}]   ;;  %s2221_s11 = inlined_call_operand.hbm [shape: f32[256,128], index: 11, kind: output, shape index: {1}]  }
   0x1   :  { %17 = sst [smem:[#allocation2]] %s2219_s9 }
   0x2   :  { %18 = vsyncpa [#allocation4], 0 }
   0x3   :  { %20 = vsyncpa [#allocation4 + $0x1], 0  ;;  %s1685_s19 = smov 0   ;;  %s1687_s20 = smov 0  }
   0x4   :  { %s1689_s21 = smov 0   ;;  %s1691_s22 = smov 0  }
   0x5 LB: > { %s1706_s9 = sadd.s32 4294967295, %s1618_s22   ;;  %s1345_s23 = sadd.s32 4294967294, %s1618_s22   ;;  %s1618_s22 = sphi %s1691_s22, %s2227_s22   ;;  %s1614_s21 = sphi %s1689_s21, %s2226_s21   ;;  %s1610_s20 = sphi %s1687_s20, %s2225_s20   ;;  %s1606_s19 = sphi %s1685_s19, %s2224_s19  }
   0x6   : > { %s1710_s24 = sadd.s32 1, %s1618_s22   ;;  %s279_s25 = sadd.s32 1, %s1614_s21 }
   0x7   : > { %s276_s26 = ssub.s32 %s1618_s22, %s1710_s24  ;;  %p289_p0 = scmp.ne.s32.totalorder %s1614_s21, %s1610_s20 }
   0x8   : > { %p277_p1 = scmp.eq.s32.totalorder %s276_s26, 0  ;;  %p290_p2 = scmp.eq.s32.totalorder %s1706_s9, 1 }
   0x9   : > { %p295_p3 = scmp.ne.s32.totalorder %s1610_s20, %s1606_s19  ;;  %p296_p4 = scmp.eq.s32.totalorder %s1345_s23, 1 }
   0xa   : > { %s1721_s27 = scalar_select %p277_p1, %s1614_s21, %s279_s25  }
   0xb   : > { %p1723_p5 = por %p290_p2, %p289_p0  ;;  %p1727_p6 = por %p296_p4, %p295_p3 }
   0xc   : > { %p1348_p7 = scmp.ge.s32.totalorder %s1618_s22, 1  ;;  %p356_p8 = scmp.lt.s32.totalorder %s1618_s22, 3 }
   0xe   : > { %p357_p9 = pnand %p1348_p7, %p356_p8 }
   0xf   : > { %s1350_s13 = sshll.u32 (!%p357_p9), %s1706_s9, 5  ;;  %s1352_s25 = sshll.u32 (!%p357_p9), %s1706_s9, 4 }
  0x10   : > { %360 = sbr.rel (%p357_p9) target bundleno = 686 (0x2ae), region = 60  ;;  %p407_p10 = scmp.lt.s32.totalorder (!%p357_p9), %s1350_s13, 63 }
  0x11   : > { %p413_p11 = scmp.lt.s32.totalorder (!%p357_p9), %s1352_s25, 31  ;;  %s1171_s14 = sld [smem:[#allocation2]] (!%p357_p9) }
  0x12   : > { %s403_s15 = sand.u32 (!%p357_p9), 1, %s1610_s20   ;;  %s1576_s18 = scalar_lea.hbm (!%p357_p9), %s2221_s11, 256 }
  0x15   : > { %v1498_v0 = vld [vmem:[%s2212_s2 + $0x8] sm:$0xff]  ;;  %v1497_v1 = vld [vmem:[%s2212_s2] sm:$0xff]  ;;  %s2229_s13 = smov (!%p407_p10, %s1350_s13), 63  ;;  %vm558_vm0 = vcmask 261120   ;;  %v1502_v8 = vld [vmem:[%s2214_s4 + $0x18] sm:$0xff]  ;;  %vm780_vm1 = vcmask 523264  }
  0x16   : > { %613 = vmatpush.bf16.msra.mxu0 %v1498_v0  ;;  %1504 = vmatpush.bf16.msra.mxu3 %v1498_v0  ;;  %s1351_s16 = sshll.u32 %s2229_s13, 2  ;;  %v1501_v10 = vld [vmem:[%s2214_s4 + $0x10] sm:$0xff]  ;;  %v1500_v12 = vld [vmem:[%s2214_s4 + $0x8] sm:$0xff]  ;;  %v1499_v13 = vld [vmem:[%s2214_s4] sm:$0xff]  ;;  %s2231_s25 = smov (!%p413_p11, %s1352_s25), 31  ;;  %vm1106_vm2 = vcmask 64512  }
  0x17   : > { %s1743_s23 = scalar_lea.vmem %s2210_s0, %s1351_s16  ;;  %833 = vmatpush.bf16.msra.mxu1 %v1502_v8  ;;  %1506 = vmatpush.bf16.msra.mxu2 %v1502_v8  ;;  %v1781_v18 = vld [vmem:[%s2213_s3] ss:$0 sm:$0xff]  ;;  %s1353_s26 = sshll.u32 %s2231_s25, 3 }
  0x18   : > { %v1481_v2 = vld [vmem:[%s1743_s23] sm:$0xff]  ;;  %v1482_v3 = vld [vmem:[%s1743_s23 + $0x8] sm:$0xff]  ;;  %v1483_v4 = vld [vmem:[%s1743_s23 + $0x10] sm:$0xff]  ;;  %s1817_s13 = scalar_lea.vmem %s2211_s1, %s1353_s26  ;;  %s1349_s16 = sshll.u32 %s403_s15, 7 }
  0x19   : > { %v1484_v5 = vld [vmem:[%s1743_s23 + $0x18] sm:$0xff]  ;;  %v1485_v6 = vld [vmem:[%s1743_s23 + $0x20] sm:$0xff]  ;;  %v1486_v7 = vld [vmem:[%s1743_s23 + $0x28] sm:$0xff]  ;;  %s2114_s17 = scalar_lea.vmem [#allocation3], %s1349_s16 }
  0x1a   : > { %614 = vmatpush.bf16.msra.mxu0 %v1497_v1  ;;  %1505 = vmatpush.bf16.msra.mxu3 %v1497_v1  ;;  %v1487_v9 = vld [vmem:[%s1743_s23 + $0x30] sm:$0xff]  ;;  %v1490_v11 = vld [vmem:[%s1743_s23 + $0x48] sm:$0xff]  ;;  %v1488_v14 = vld [vmem:[%s1743_s23 + $0x38] sm:$0xff] }
  0x1b   : > { %834 = vmatpush.bf16.msra.mxu1 %v1501_v10  ;;  %1507 = vmatpush.bf16.msra.mxu2 %v1501_v10  ;;  %v1491_v15 = vld [vmem:[%s1743_s23 + $0x50] sm:$0xff]  ;;  %v1489_v16 = vld [vmem:[%s1743_s23 + $0x40] sm:$0xff]  ;;  %v1492_v19 = vld [vmem:[%s1743_s23 + $0x58] sm:$0xff] }
  0x1c   : > { %v1493_v27 = vld [vmem:[%s1743_s23 + $0x60] sm:$0xff]  ;;  %v1494_v35 = vld [vmem:[%s1743_s23 + $0x68] sm:$0xff]  ;;  %v1495_v43 = vld [vmem:[%s1743_s23 + $0x70] sm:$0xff] }
  0x1d   : > { %1428 = vmatmul.msk.bf16.vlgmr.msra.gmra.mxu0 %vm558_vm0, %v1481_v2  ;;  %1437 = vmatmul.msk.bf16.vlgmr.msra.gmra.mxu3 %vm558_vm0, %v1490_v11  ;;  %v1496_v51 = vld [vmem:[%s1743_s23 + $0x78] sm:$0xff]  ;;  %v1822_v58 = vld [vmem:[%s2218_s8] ss:$0 sm:$0xff]  ;;  %v1071_v59 = vld [vmem:[%s1817_s13 + $0x8] sm:$0xff]  ;;  %s1890_s23 = scalar_lea.vmem %s2220_s10, %s1353_s26 }
  0x1e   : > { %v1091_v60 = vmul.f32 %v1822_v58, %v1071_v59  ;;  %v1074_v63 = vld [vmem:[%s1817_s13 + $0x20] sm:$0xff]  ;;  %v1072_v8 = vld [vmem:[%s1817_s13 + $0x10] sm:$0xff] }
  0x1f   : > { %835 = vmatpush.bf16.msra.mxu1 %v1500_v12  ;;  %1508 = vmatpush.bf16.msra.mxu2 %v1500_v12  ;;  %v1094_v1 = vmul.f32 %v1822_v58, %v1074_v63  ;;  %v1092_v10 = vmul.f32 %v1822_v58, %v1072_v8  ;;  %v1877_v63 = vld [vmem:[%s2215_s5] ss:$0 sm:$0xff] }
  0x20   : > { %v1110_v62 = vsel %vm1106_vm2, %v1091_v60, 0.0 }
  0x21   : > { %1111 = vadd.xlane.f32.xlu0 %v1110_v62 }
  0x23   : > { %836 = vmatpush.bf16.msra.mxu1 %v1499_v13  ;;  %1509 = vmatpush.bf16.msra.mxu2 %v1499_v13  ;;  %v1113_v13 = vsel %vm1106_vm2, %v1092_v10, 0.0 }
  0x24   : > { %1114 = vadd.xlane.f32.xlu1 %v1113_v13 }
  0x2d   : > { %1429 = vmatmul.msk.bf16.gmra.mxu0 %vm558_vm0, %v1482_v3  ;;  %1438 = vmatmul.msk.bf16.gmra.mxu3 %vm558_vm0, %v1491_v15  ;;  %v1075_v15 = vld [vmem:[%s1817_s13 + $0x28] sm:$0xff] }
  0x3d   : > { %1430 = vmatmul.msk.bf16.gmra.mxu0 %vm558_vm0, %v1483_v4  ;;  %1439 = vmatmul.msk.bf16.gmra.mxu3 %vm558_vm0, %v1492_v19  ;;  %v1119_v4 = vsel %vm1106_vm2, %v1094_v1, 0.0 }
  0x3e   : > { %1120 = vadd.xlane.f32.xlu0 %v1119_v4 }
  0x4d   : > { %1431 = vmatmul.msk.bf16.gmra.mxu0 %vm558_vm0, %v1484_v5  ;;  %1440 = vmatmul.msk.bf16.gmra.mxu3 %vm558_vm0, %v1493_v27 }
  0x5d   : > { %1432 = vmatmul.msk.bf16.gmra.mxu0 %vm558_vm0, %v1485_v6  ;;  %1441 = vmatmul.msk.bf16.gmra.mxu3 %vm558_vm0, %v1494_v35 }
  0x6d   : > { %1433 = vmatmul.msk.bf16.gmra.mxu0 %vm558_vm0, %v1486_v7  ;;  %1442 = vmatmul.msk.bf16.gmra.mxu3 %vm558_vm0, %v1495_v43 }
  0x7d   : > { %1434 = vmatmul.msk.bf16.gmra.mxu0 %vm558_vm0, %v1487_v9  ;;  %1443 = vmatmul.msk.bf16.gmra.mxu3 %vm558_vm0, %v1496_v51  ;;  %v1077_v9 = vld [vmem:[%s1817_s13 + $0x38] sm:$0xff] }
  0x7e   : > { %v1097_v11 = vmul.f32 %v1822_v58, %v1077_v9 }
  0x8d   : > { %1435 = vmatmul.msk.bf16.gmra.mxu0 %vm558_vm0, %v1488_v14  ;;  %v1128_v14 = vsel %vm1106_vm2, %v1097_v11, 0.0 }
  0x8e   : > { %1129 = vadd.xlane.f32.xlu0 %v1128_v14 }
  0x9a   : > { %v616_v17 = vpop.f32.mrf.mxu0 }
  0x9b   : > { %v617_v20 = vadd.f32 %v1781_v18, %v616_v17  ;;  %v1070_v17 = vld [vmem:[%s1817_s13] sm:$0xff] }
  0x9d   : > { %1436 = vmatmul.msk.bf16.gmra.mxu0 %vm558_vm0, %v1489_v16  ;;  %v696_v23 = vmax.f32 %v617_v20, 0.0  ;;  %v1080_v16 = vld [vmem:[%s1817_s13 + $0x50] sm:$0xff]  ;;  %v1095_v20 = vmul.f32 %v1822_v58, %v1075_v15 }
  0xa2   : > { %v618_v21 = vpop.f32.mrf.mxu0 }
  0xa3   : > { %v619_v22 = vadd.f32 %v1781_v18, %v618_v21  ;;  %v1100_v21 = vmul.f32 %v1822_v58, %v1080_v16 }
  0xa5   : > { %v697_v24 = vmax.f32 %v619_v22, 0.0  ;;  %v1090_v22 = vmul.f32 %v1822_v58, %v1070_v17 }
  0xa7   : > { %v728_v25 = vpack.c.bf16 %v697_v24, %v696_v23  ;;  %v1107_v27 = vsel %vm1106_vm2, %v1090_v22, 0.0 }
  0xa8   : > { %1108 = vadd.xlane.f32.xlu2 %v1107_v27 }
  0xa9   : > { %1460 = vmatmul.msk.bf16.vlgmr.msra.gmra.mxu1 %vm780_vm1, %v728_v25  ;;  %v1122_v25 = vsel %vm1106_vm2, %v1095_v20, 0.0 }
  0xaa   : > { %v621_v26 = vpop.f32.mrf.mxu0  ;;  %1123 = vadd.xlane.f32.xlu1 %v1122_v25 }
  0xab   : > { %v622_v28 = vadd.f32 %v1781_v18, %v621_v26  ;;  %v1137_v26 = vsel %vm1106_vm2, %v1100_v21, 0.0 }
  0xac   : > { %1138 = vadd.xlane.f32.xlu0 %v1137_v26 }
  0xad   : > { %v698_v31 = vmax.f32 %v622_v28, 0.0 }
  0xb2   : > { %v623_v29 = vpop.f32.mrf.mxu0 }
  0xb3   : > { %v624_v30 = vadd.f32 %v1781_v18, %v623_v29 }
  0xb5   : > { %v699_v32 = vmax.f32 %v624_v30, 0.0 }
  0xb7   : > { %v729_v33 = vpack.c.bf16 %v699_v32, %v698_v31  ;;  %v1078_v31 = vld [vmem:[%s1817_s13 + $0x40] sm:$0xff]  ;;  %v1073_v32 = vld [vmem:[%s1817_s13 + $0x18] sm:$0xff] }
  0xb9   : > { %1461 = vmatmul.msk.bf16.gmra.mxu1 %vm780_vm1, %v729_v33  ;;  %v1098_v33 = vmul.f32 %v1822_v58, %v1078_v31 }
  0xba   : > { %v626_v34 = vpop.f32.mrf.mxu0 }
  0xbb   : > { %v627_v36 = vadd.f32 %v1781_v18, %v626_v34  ;;  %v1093_v34 = vmul.f32 %v1822_v58, %v1073_v32 }
  0xbd   : > { %v700_v39 = vmax.f32 %v627_v36, 0.0  ;;  %v661_v36 = vpop.f32.mrf.mxu3 }
  0xbe   : > { %v662_v11 = vadd.f32 %v1781_v18, %v661_v36 }
  0xc0   : > { %v714_v16 = vmax.f32 %v662_v11, 0.0 }
  0xc2   : > { %v628_v37 = vpop.f32.mrf.mxu0 }
  0xc3   : > { %v629_v38 = vadd.f32 %v1781_v18, %v628_v37  ;;  %v1131_v37 = vsel %vm1106_vm2, %v1098_v33, 0.0 }
  0xc4   : > { %1132 = vadd.xlane.f32.xlu1 %v1131_v37 }
  0xc5   : > { %v701_v40 = vmax.f32 %v629_v38, 0.0  ;;  %v1116_v38 = vsel %vm1106_vm2, %v1093_v34, 0.0 }
  0xc6   : > { %1117 = vadd.xlane.f32.xlu2 %v1116_v38 }
  0xc7   : > { %v730_v41 = vpack.c.bf16 %v701_v40, %v700_v39  ;;  %v1081_v39 = vld [vmem:[%s1817_s13 + $0x58] sm:$0xff]  ;;  %v1076_v40 = vld [vmem:[%s1817_s13 + $0x30] sm:$0xff] }
  0xc8   : > { %v1096_v43 = vmul.f32 %v1822_v58, %v1076_v40 }
  0xc9   : > { %1462 = vmatmul.msk.bf16.gmra.mxu1 %vm780_vm1, %v730_v41 }
  0xca   : > { %v631_v42 = vpop.f32.mrf.mxu0 }
  0xcb   : > { %v632_v44 = vadd.f32 %v1781_v18, %v631_v42  ;;  %v1101_v42 = vmul.f32 %v1822_v58, %v1081_v39 }
  0xcd   : > { %v702_v47 = vmax.f32 %v632_v44, 0.0 }
  0xd2   : > { %v633_v45 = vpop.f32.mrf.mxu0 }
  0xd3   : > { %v634_v46 = vadd.f32 %v1781_v18, %v633_v45 }
  0xd5   : > { %v703_v48 = vmax.f32 %v634_v46, 0.0  ;;  %v1140_v46 = vsel %vm1106_vm2, %v1101_v42, 0.0 }
  0xd6   : > { %1141 = vadd.xlane.f32.xlu1 %v1140_v46 }
  0xd7   : > { %v731_v49 = vpack.c.bf16 %v703_v48, %v702_v47  ;;  %v1125_v47 = vsel %vm1106_vm2, %v1096_v43, 0.0  ;;  %v663_v48 = vpop.f32.mrf.mxu3 }
  0xd8   : > { %1126 = vadd.xlane.f32.xlu2 %v1125_v47 }
  0xd9   : > { %1463 = vmatmul.msk.bf16.gmra.mxu1 %vm780_vm1, %v731_v49 }
  0xda   : > { %v636_v50 = vpop.f32.mrf.mxu0 }
  0xdb   : > { %v637_v52 = vadd.f32 %v1781_v18, %v636_v50 }
  0xdd   : > { %v704_v55 = vmax.f32 %v637_v52, 0.0  ;;  %v1079_v52 = vld [vmem:[%s1817_s13 + $0x48] sm:$0xff] }
  0xe2   : > { %v638_v53 = vpop.f32.mrf.mxu0 }
  0xe3   : > { %v639_v54 = vadd.f32 %v1781_v18, %v638_v53  ;;  %v1099_v53 = vmul.f32 %v1822_v58, %v1079_v52 }
  0xe5   : > { %v705_v56 = vmax.f32 %v639_v54, 0.0 }
  0xe7   : > { %v732_v57 = vpack.c.bf16 %v705_v56, %v704_v55  ;;  %v1134_v55 = vsel %vm1106_vm2, %v1099_v53, 0.0  ;;  %v666_v56 = vpop.f32.mrf.mxu3 }
  0xe8   : > { %1135 = vadd.xlane.f32.xlu2 %v1134_v55  ;;  %v667_v27 = vadd.f32 %v1781_v18, %v666_v56 }
  0xe9   : > { %1464 = vmatmul.msk.bf16.gmra.mxu1 %vm780_vm1, %v732_v57  ;;  %v1082_v57 = vld [vmem:[%s1817_s13 + $0x60] sm:$0xff] }
  0xea   : > { %v641_v61 = vpop.f32.mrf.mxu0  ;;  %v1102_v60 = vmul.f32 %v1822_v58, %v1082_v57  ;;  %v716_v31 = vmax.f32 %v667_v27, 0.0 }
  0xeb   : > { %v642_v0 = vadd.f32 %v1781_v18, %v641_v61 }
  0xed   : > { %v706_v5 = vmax.f32 %v642_v0, 0.0  ;;  %v1143_v0 = vsel %vm1106_vm2, %v1102_v60, 0.0 }
  0xf0   : > { %1144 = vadd.xlane.f32.xlu2 %v1143_v0 }
  0xf2   : > { %v643_v2 = vpop.f32.mrf.mxu0 }
  0xf3   : > { %v644_v3 = vadd.f32 %v1781_v18, %v643_v2 }
  0xf5   : > { %v707_v6 = vmax.f32 %v644_v3, 0.0  ;;  %v1883_v3 = vld [vmem:[%s2216_s6] ss:$0 sm:$0xff] }
  0xf7   : > { %v733_v7 = vpack.c.bf16 %v707_v6, %v706_v5 }
  0xf9   : > { %1465 = vmatmul.msk.bf16.gmra.mxu1 %vm780_vm1, %v733_v7  ;;  %v668_v7 = vpop.f32.mrf.mxu3 }
  0xfa   : > { %v646_v12 = vpop.f32.mrf.mxu0 }
  0xfb   : > { %v647_v19 = vadd.f32 %v1781_v18, %v646_v12  ;;  %v664_v12 = vadd.f32 %v1781_v18, %v663_v48 }
  0xfd   : > { %v708_v28 = vmax.f32 %v647_v19, 0.0  ;;  %v715_v17 = vmax.f32 %v664_v12, 0.0 }
  0xff   : > { %v737_v21 = vpack.c.bf16 %v715_v17, %v714_v16 }
 0x101   : > { %v671_v15 = vpop.f32.mrf.mxu3 }
 0x102   : > { %v648_v23 = vpop.f32.mrf.mxu0 }
 0x103   : > { %v649_v24 = vadd.f32 %v1781_v18, %v648_v23 }
 0x105   : > { %v709_v29 = vmax.f32 %v649_v24, 0.0 }
 0x107   : > { %v734_v30 = vpack.c.bf16 %v709_v29, %v708_v28  ;;  %v669_v28 = vadd.f32 %v1781_v18, %v668_v7 }
 0x109   : > { %1466 = vmatmul.msk.bf16.gmra.mxu1 %vm780_vm1, %v734_v30  ;;  %v673_v25 = vpop.f32.mrf.mxu3  ;;  %v717_v32 = vmax.f32 %v669_v28, 0.0 }
 0x10a   : > { %v651_v35 = vpop.f32.mrf.mxu0  ;;  %v674_v42 = vadd.f32 %v1781_v18, %v673_v25 }
 0x10b   : > { %v652_v41 = vadd.f32 %v1781_v18, %v651_v35  ;;  %v738_v36 = vpack.c.bf16 %v717_v32, %v716_v31 }
 0x10c   : > { %v719_v47 = vmax.f32 %v674_v42, 0.0 }
 0x10d   : > { %v710_v49 = vmax.f32 %v652_v41, 0.0  ;;  %v672_v41 = vadd.f32 %v1781_v18, %v671_v15 }
 0x10f   : > { %v718_v46 = vmax.f32 %v672_v41, 0.0 }
 0x111   : > { %v676_v35 = vpop.f32.mrf.mxu3 }
 0x112   : > { %v653_v44 = vpop.f32.mrf.mxu0  ;;  %v677_v56 = vadd.f32 %v1781_v18, %v676_v35 }
 0x113   : > { %v654_v45 = vadd.f32 %v1781_v18, %v653_v44 }
 0x115   : > { %v711_v50 = vmax.f32 %v654_v45, 0.0 }
 0x117   : > { %v735_v51 = vpack.c.bf16 %v711_v50, %v710_v49  ;;  %v739_v50 = vpack.c.bf16 %v719_v47, %v718_v46 }
 0x119   : > { %1467 = vmatmul.msk.bf16.gmra.mxu1 %vm780_vm1, %v735_v51  ;;  %v678_v44 = vpop.f32.mrf.mxu3 }
 0x11a   : > { %v656_v54 = vpop.f32.mrf.mxu0  ;;  %v679_v57 = vadd.f32 %v1781_v18, %v678_v44 }
 0x11b   : > { %v657_v59 = vadd.f32 %v1781_v18, %v656_v54 }
 0x11d   : > { %v712_v1 = vmax.f32 %v657_v59, 0.0 }
 0x121   : > { %v681_v53 = vpop.f32.mrf.mxu3 }
 0x122   : > { %v658_v61 = vpop.f32.mrf.mxu0 }
 0x123   : > { %v659_v62 = vadd.f32 %v1781_v18, %v658_v61  ;;  %v720_v61 = vmax.f32 %v677_v56, 0.0 }
 0x125   : > { %v713_v2 = vmax.f32 %v659_v62, 0.0  ;;  %v721_v62 = vmax.f32 %v679_v57, 0.0 }
 0x126   : > { %v838_v4 = vpop.f32.mrf.mxu1 }
 0x127   : > { %v736_v5 = vpack.c.bf16 %v713_v2, %v712_v1  ;;  %v839_v6 = vadd.f32 %v1877_v63, %v838_v4  ;;  %v740_v4 = vpack.c.bf16 %v721_v62, %v720_v61 }
 0x129   : > { %1189 = vst.msk [vmem:[%s1890_s23] sm:$0xff] %vm558_vm0, %v839_v6  ;;  %1468 = vmatmul.msk.bf16.vlgmr.msra.gmra.mxu2 %vm780_vm1, %v736_v5  ;;  %v922_v8 = vmul.f32 %v1883_v3, %v839_v6  ;;  %v683_v1 = vpop.f32.mrf.mxu3 }
 0x12a   : > { %v684_v11 = vadd.f32 %v1781_v18, %v683_v1 }
 0x12b   : > { %v938_v9 = vsel %vm558_vm0, %v922_v8, 0.0 }
 0x12c   : > { %939 = vadd.xlane.f32.xlu0 %v938_v9  ;;  %v723_v15 = vmax.f32 %v684_v11, 0.0 }
 0x12e   : > { %v840_v10 = vpop.f32.mrf.mxu1 }
 0x12f   : > { %v841_v13 = vadd.f32 %v1877_v63, %v840_v10  ;;  %v682_v10 = vadd.f32 %v1781_v18, %v681_v53 }
 0x131   : > { %1190 = vst.msk [vmem:[%s1890_s23 + $0x8] sm:$0xff] %vm558_vm0, %v841_v13  ;;  %v923_v14 = vmul.f32 %v1883_v3, %v841_v13  ;;  %v686_v9 = vpop.f32.mrf.mxu3 }
 0x132   : > { %v687_v25 = vadd.f32 %v1781_v18, %v686_v9 }
 0x133   : > { %v941_v19 = vsel %vm558_vm0, %v923_v14, 0.0  ;;  %v722_v14 = vmax.f32 %v682_v10, 0.0 }
 0x134   : > { %942 = vadd.xlane.f32.xlu0 %v941_v19 }
 0x135   : > { %v741_v19 = vpack.c.bf16 %v723_v15, %v722_v14  ;;  %v2016_v15 = vpop.xlane.xlu1 %1114 }
 0x136   : > { %v843_v20 = vpop.f32.mrf.mxu1 }
 0x137   : > { %v844_v22 = vadd.f32 %v1877_v63, %v843_v20 }
 0x139   : > { %1191 = vst.msk [vmem:[%s1890_s23 + $0x10] sm:$0xff] %vm558_vm0, %v844_v22  ;;  %1469 = vmatmul.msk.bf16.gmra.mxu2 %vm780_vm1, %v737_v21  ;;  %v924_v23 = vmul.f32 %v1883_v3, %v844_v22  ;;  %v688_v21 = vpop.f32.mrf.mxu3 }
 0x13b   : > { %v944_v24 = vsel %vm558_vm0, %v924_v23, 0.0 }
 0x13c   : > { %945 = vadd.xlane.f32.xlu1 %v944_v24 }
 0x13e   : > { %v845_v26 = vpop.f32.mrf.mxu1 }
 0x13f   : > { %v846_v29 = vadd.f32 %v1877_v63, %v845_v26  ;;  %v689_v26 = vadd.f32 %v1781_v18, %v688_v21  ;;  %v2021_v21 = vpop.xlane.xlu0 %1111 }
 0x141   : > { %1192 = vst.msk [vmem:[%s1890_s23 + $0x18] sm:$0xff] %vm558_vm0, %v846_v29  ;;  %v925_v30 = vmul.f32 %v1883_v3, %v846_v29  ;;  %v691_v29 = vpop.f32.mrf.mxu3  ;;  %v725_v31 = vmax.f32 %v689_v26, 0.0 }
 0x143   : > { %v947_v33 = vsel %vm558_vm0, %v925_v30, 0.0  ;;  %v724_v30 = vmax.f32 %v687_v25, 0.0 }
 0x144   : > { %948 = vadd.xlane.f32.xlu1 %v947_v33 }
 0x146   : > { %v848_v34 = vpop.f32.mrf.mxu1 }
 0x147   : > { %v849_v37 = vadd.f32 %v1877_v63, %v848_v34  ;;  %v742_v34 = vpack.c.bf16 %v725_v31, %v724_v30 }
 0x149   : > { %1193 = vst.msk [vmem:[%s1890_s23 + $0x20] sm:$0xff] %vm558_vm0, %v849_v37  ;;  %1470 = vmatmul.msk.bf16.gmra.mxu2 %vm780_vm1, %v738_v36  ;;  %v926_v38 = vmul.f32 %v1883_v3, %v849_v37 }
 0x14b   : > { %v950_v39 = vsel %vm558_vm0, %v926_v38, 0.0  ;;  %v693_v38 = vpop.f32.mrf.mxu3 }
 0x14c   : > { %951 = vadd.xlane.f32.xlu2 %v950_v39  ;;  %v694_v41 = vadd.f32 %v1781_v18, %v693_v38 }
 0x14e   : > { %v850_v40 = vpop.f32.mrf.mxu1 }
 0x14f   : > { %v851_v43 = vadd.f32 %v1877_v63, %v850_v40  ;;  %v692_v40 = vadd.f32 %v1781_v18, %v691_v29 }
 0x151   : > { %1194 = vst.msk [vmem:[%s1890_s23 + $0x28] sm:$0xff] %vm558_vm0, %v851_v43  ;;  %v927_v45 = vmul.f32 %v1883_v3, %v851_v43  ;;  %v726_v44 = vmax.f32 %v692_v40, 0.0 }
 0x153   : > { %v953_v48 = vsel %vm558_vm0, %v927_v45, 0.0  ;;  %v727_v45 = vmax.f32 %v694_v41, 0.0 }
 0x154   : > { %954 = vadd.xlane.f32.xlu2 %v953_v48 }
 0x155   : > { %v743_v48 = vpack.c.bf16 %v727_v45, %v726_v44 }
 0x156   : > { %v853_v49 = vpop.f32.mrf.mxu1 }
 0x157   : > { %v854_v51 = vadd.f32 %v1877_v63, %v853_v49 }
 0x159   : > { %1195 = vst.msk [vmem:[%s1890_s23 + $0x30] sm:$0xff] %vm558_vm0, %v854_v51  ;;  %1471 = vmatmul.msk.bf16.gmra.mxu2 %vm780_vm1, %v739_v50  ;;  %v928_v52 = vmul.f32 %v1883_v3, %v854_v51 }
 0x15b   : > { %v956_v54 = vsel %vm558_vm0, %v928_v52, 0.0 }
 0x15c   : > { %957 = vadd.xlane.f32.xlu0 %v956_v54 }
 0x15e   : > { %v855_v55 = vpop.f32.mrf.mxu1 }
 0x15f   : > { %v856_v59 = vadd.f32 %v1877_v63, %v855_v55  ;;  %v1997_v55 = vld [vmem:[%s2217_s7] ss:$0 sm:$0xff] }
 0x161   : > { %1196 = vst.msk [vmem:[%s1890_s23 + $0x38] sm:$0xff] %vm558_vm0, %v856_v59  ;;  %v929_v60 = vmul.f32 %v1883_v3, %v856_v59 }
 0x163   : > { %v959_v0 = vsel %vm558_vm0, %v929_v60, 0.0 }
 0x164   : > { %960 = vadd.xlane.f32.xlu1 %v959_v0 }
 0x166   : > { %v858_v2 = vpop.f32.mrf.mxu1 }
 0x167   : > { %v859_v5 = vadd.f32 %v1877_v63, %v858_v2 }
 0x169   : > { %1197 = vst.msk [vmem:[%s1890_s23 + $0x40] sm:$0xff] %vm558_vm0, %v859_v5  ;;  %1472 = vmatmul.msk.bf16.gmra.mxu2 %vm780_vm1, %v740_v4  ;;  %v930_v6 = vmul.f32 %v1883_v3, %v859_v5 }
 0x16b   : > { %v962_v7 = vsel %vm558_vm0, %v930_v6, 0.0 }
 0x16c   : > { %963 = vadd.xlane.f32.xlu2 %v962_v7 }
 0x16e   : > { %v860_v8 = vpop.f32.mrf.mxu1 }
 0x16f   : > { %v861_v12 = vadd.f32 %v1877_v63, %v860_v8 }
 0x171   : > { %1198 = vst.msk [vmem:[%s1890_s23 + $0x48] sm:$0xff] %vm558_vm0, %v861_v12  ;;  %v931_v13 = vmul.f32 %v1883_v3, %v861_v12 }
 0x173   : > { %v965_v16 = vsel %vm558_vm0, %v931_v13, 0.0  ;;  %v2013_v13 = vpop.xlane.xlu2 %1108 }
 0x174   : > { %966 = vadd.xlane.f32.xlu0 %v965_v16 }
 0x176   : > { %v863_v17 = vpop.f32.mrf.mxu1 }
 0x177   : > { %v864_v20 = vadd.f32 %v1877_v63, %v863_v17 }
 0x179   : > { %1199 = vst.msk [vmem:[%s1890_s23 + $0x50] sm:$0xff] %vm558_vm0, %v864_v20  ;;  %1473 = vmatmul.msk.bf16.gmra.mxu2 %vm780_vm1, %v741_v19  ;;  %v932_v22 = vmul.f32 %v1883_v3, %v864_v20 }
 0x17b   : > { %v968_v23 = vsel %vm558_vm0, %v932_v22, 0.0  ;;  %v2023_v22 = vpop.xlane.xlu2 %1117 }
 0x17c   : > { %969 = vadd.xlane.f32.xlu1 %v968_v23 }
 0x17e   : > { %v865_v24 = vpop.f32.mrf.mxu1 }
 0x17f   : > { %v866_v27 = vadd.f32 %v1877_v63, %v865_v24  ;;  %v2025_v24 = vpop.xlane.xlu1 %1123 }
 0x181   : > { %1200 = vst.msk [vmem:[%s1890_s23 + $0x58] sm:$0xff] %vm558_vm0, %v866_v27  ;;  %v933_v28 = vmul.f32 %v1883_v3, %v866_v27 }
 0x183   : > { %v971_v32 = vsel %vm558_vm0, %v933_v28, 0.0  ;;  %v2030_v28 = vpop.xlane.xlu0 %1120  ;;  %v2032_v30 = vpop.xlane.xlu2 %1126 }
 0x184   : > { %972 = vadd.xlane.f32.xlu2 %v971_v32 }
 0x186   : > { %v868_v33 = vpop.f32.mrf.mxu1 }
 0x187   : > { %v869_v35 = vadd.f32 %v1877_v63, %v868_v33  ;;  %v2035_v32 = vpop.xlane.xlu1 %1132 }
 0x189   : > { %1201 = vst.msk [vmem:[%s1890_s23 + $0x60] sm:$0xff] %vm558_vm0, %v869_v35  ;;  %1474 = vmatmul.msk.bf16.gmra.mxu2 %vm780_vm1, %v742_v34  ;;  %v934_v36 = vmul.f32 %v1883_v3, %v869_v35 }
 0x18b   : > { %v974_v37 = vsel %vm558_vm0, %v934_v36, 0.0  ;;  %v2042_v38 = vpop.xlane.xlu2 %1135 }
 0x18c   : > { %975 = vadd.xlane.f32.xlu0 %v974_v37  ;;  %v2040_v37 = vpop.xlane.xlu0 %1129 }
 0x18e   : > { %v870_v39 = vpop.f32.mrf.mxu1 }
 0x18f   : > { %v871_v42 = vadd.f32 %v1877_v63, %v870_v39  ;;  %v2045_v40 = vpop.xlane.xlu1 %1141 }
 0x191   : > { %1202 = vst.msk [vmem:[%s1890_s23 + $0x68] sm:$0xff] %vm558_vm0, %v871_v42  ;;  %v935_v43 = vmul.f32 %v1883_v3, %v871_v42 }
 0x193   : > { %v977_v46 = vsel %vm558_vm0, %v935_v43, 0.0 }
 0x194   : > { %978 = vadd.xlane.f32.xlu1 %v977_v46  ;;  %v2050_v45 = vpop.xlane.xlu0 %1138  ;;  %v2052_v46 = vpop.xlane.xlu2 %1144 }
 0x196   : > { %v873_v47 = vpop.f32.mrf.mxu1 }
 0x197   : > { %v874_v49 = vadd.f32 %v1877_v63, %v873_v47 }
 0x199   : > { %1203 = vst.msk [vmem:[%s1890_s23 + $0x70] sm:$0xff] %vm558_vm0, %v874_v49  ;;  %1475 = vmatmul.msk.bf16.gmra.mxu2 %vm780_vm1, %v743_v48  ;;  %v936_v18 = vmul.f32 %v1883_v3, %v874_v49 }
 0x19b   : > { %v980_v50 = vsel %vm558_vm0, %v936_v18, 0.0 }
 0x19c   : > { %981 = vadd.xlane.f32.xlu2 %v980_v50 }
 0x19e   : > { %v875_v51 = vpop.f32.mrf.mxu1 }
 0x19f   : > { %v876_v52 = vadd.f32 %v1877_v63, %v875_v51 }
 0x1a1   : > { %1204 = vst.msk [vmem:[%s1890_s23 + $0x78] sm:$0xff] %vm558_vm0, %v876_v52  ;;  %v937_v53 = vmul.f32 %v1883_v3, %v876_v52  ;;  %v940_v52 = vpop.xlane.xlu0 %939  ;;  %s1243_s23 = sshll.u32 %s2114_s17, 4  ;;  %s1244_s23 = int_to_ptr.vmem [resolvable:$true] %s1243_s23 }
 0x1a3   : > { %v983_v54 = vsel %vm558_vm0, %v937_v53, 0.0 }
 0x1a4   : > { %984 = vadd.xlane.f32.xlu0 %v983_v54 }
 0x1ac   : > { %v878_v56 = vpop.f32.mrf.mxu2 }
 0x1ad   : > { %v879_v57 = vadd.f32 %v1877_v63, %v878_v56 }
 0x1af   : > { %v990_v59 = vmul.f32 %v1997_v55, %v879_v57  ;;  %v2055_v48 = vpop.xlane.xlu1 %945 }
 0x1b1   : > { %v1006_v60 = vsel %vm558_vm0, %v990_v59, 0.0 }
 0x1b2   : > { %1007 = vadd.xlane.f32.xlu1 %v1006_v60 }
 0x1b4   : > { %v880_v61 = vpop.f32.mrf.mxu2 }
 0x1b5   : > { %v881_v62 = vadd.f32 %v1877_v63, %v880_v61  ;;  %v943_v61 = vpop.xlane.xlu0 %942 }
 0x1b7   : > { %v991_v3 = vmul.f32 %v1997_v55, %v881_v62  ;;  %v2062_v56 = vpop.xlane.xlu1 %948 }
 0x1b9   : > { %v1009_v0 = vsel %vm558_vm0, %v991_v3, 0.0 }
 0x1ba   : > { %1010 = vadd.xlane.f32.xlu2 %v1009_v0 }
 0x1bc   : > { %v883_v1 = vpop.f32.mrf.mxu2 }
 0x1bd   : > { %v884_v2 = vadd.f32 %v1877_v63, %v883_v1 }
 0x1bf   : > { %v992_v4 = vmul.f32 %v1997_v55, %v884_v2  ;;  %v2060_v53 = vpop.xlane.xlu2 %951 }
 0x1c1   : > { %v1012_v5 = vsel %vm558_vm0, %v992_v4, 0.0 }
 0x1c2   : > { %1013 = vadd.xlane.f32.xlu0 %v1012_v5 }
 0x1c4   : > { %v885_v6 = vpop.f32.mrf.mxu2 }
 0x1c5   : > { %v886_v7 = vadd.f32 %v1877_v63, %v885_v6 }
 0x1c7   : > { %v993_v8 = vmul.f32 %v1997_v55, %v886_v7  ;;  %v2067_v3 = vpop.xlane.xlu2 %954 }
 0x1c9   : > { %v1015_v9 = vsel %vm558_vm0, %v993_v8, 0.0 }
 0x1ca   : > { %1016 = vadd.xlane.f32.xlu1 %v1015_v9 }
 0x1cc   : > { %v888_v10 = vpop.f32.mrf.mxu2 }
 0x1cd   : > { %v889_v11 = vadd.f32 %v1877_v63, %v888_v10 }
 0x1cf   : > { %v994_v12 = vmul.f32 %v1997_v55, %v889_v11  ;;  %v2074_v5 = vpop.xlane.xlu0 %957  ;;  %v1085_v11 = vld [vmem:[%s1817_s13 + $0x78] sm:$0xff] }
 0x1d1   : > { %v1018_v14 = vsel %vm558_vm0, %v994_v12, 0.0 }
 0x1d2   : > { %1019 = vadd.xlane.f32.xlu2 %v1018_v14  ;;  %v1105_v14 = vmul.f32 %v1822_v58, %v1085_v11 }
 0x1d4   : > { %v890_v16 = vpop.f32.mrf.mxu2 }
 0x1d5   : > { %v891_v17 = vadd.f32 %v1877_v63, %v890_v16 }
 0x1d7   : > { %v995_v19 = vmul.f32 %v1997_v55, %v891_v17  ;;  %v2069_v0 = vpop.xlane.xlu1 %960 }
 0x1d9   : > { %v1021_v20 = vsel %vm558_vm0, %v995_v19, 0.0 }
 0x1da   : > { %1022 = vadd.xlane.f32.xlu0 %v1021_v20 }
 0x1dc   : > { %v893_v23 = vpop.f32.mrf.mxu2 }
 0x1dd   : > { %v894_v25 = vadd.f32 %v1877_v63, %v893_v23 }
 0x1df   : > { %v996_v26 = vmul.f32 %v1997_v55, %v894_v25  ;;  %v2076_v7 = vpop.xlane.xlu2 %963 }
 0x1e1   : > { %v1024_v27 = vsel %vm558_vm0, %v996_v26, 0.0  ;;  %v1152_v26 = vsel %vm1106_vm2, %v1105_v14, 0.0 }
 0x1e2   : > { %1025 = vadd.xlane.f32.xlu1 %v1024_v27  ;;  %v1083_v27 = vld [vmem:[%s1817_s13 + $0x68] sm:$0xff] }
 0x1e4   : > { %v895_v29 = vpop.f32.mrf.mxu2 }
 0x1e5   : > { %v896_v31 = vadd.f32 %v1877_v63, %v895_v29 }
 0x1e7   : > { %v997_v33 = vmul.f32 %v1997_v55, %v896_v31  ;;  %v2085_v16 = vpop.xlane.xlu0 %966  ;;  %v1103_v31 = vmul.f32 %v1822_v58, %v1083_v27 }
 0x1e9   : > { %v1027_v34 = vsel %vm558_vm0, %v997_v33, 0.0 }
 0x1ea   : > { %1028 = vadd.xlane.f32.xlu2 %v1027_v34 }
 0x1ec   : > { %v898_v35 = vpop.f32.mrf.mxu2 }
 0x1ed   : > { %v899_v36 = vadd.f32 %v1877_v63, %v898_v35 }
 0x1ef   : > { %v998_v39 = vmul.f32 %v1997_v55, %v899_v36  ;;  %v2078_v8 = vpop.xlane.xlu1 %969 }
 0x1f1   : > { %v1030_v41 = vsel %vm558_vm0, %v998_v39, 0.0 }
 0x1f2   : > { %1031 = vadd.xlane.f32.xlu0 %v1030_v41 }
 0x1f4   : > { %v900_v42 = vpop.f32.mrf.mxu2 }
 0x1f5   : > { %v901_v43 = vadd.f32 %v1877_v63, %v900_v42  ;;  %v2105_v42 = vstv %s1171_s14 }
 0x1f7   : > { %v999_v44 = vmul.f32 %v1997_v55, %v901_v43  ;;  %v2087_v19 = vpop.xlane.xlu2 %972 }
 0x1f9   : > { %v1033_v47 = vsel %vm558_vm0, %v999_v44, 0.0  ;;  %v1146_v44 = vsel %vm1106_vm2, %v1103_v31, 0.0 }
 0x1fa   : > { %1034 = vadd.xlane.f32.xlu1 %v1033_v47 }
 0x1fc   : > { %v903_v49 = vpop.f32.mrf.mxu2 }
 0x1fd   : > { %v904_v18 = vadd.f32 %v1877_v63, %v903_v49  ;;  %v1084_v49 = vld [vmem:[%s1817_s13 + $0x70] sm:$0xff]  ;;  %s1503_s13 = sshll.u32 %s1706_s9, 7  ;;  %s1227_s9 = scalar_lea.sflag [#allocation4], %s403_s15 }
 0x1fe   : > { %s1242_s12 = scalar_lea.hbm %s2221_s11, %s1503_s13 }
 0x1ff   : > { %v1000_v50 = vmul.f32 %v1997_v55, %v904_v18  ;;  %v2098_v33 = vpop.xlane.xlu0 %975  ;;  %s1245_s25 = sshll.u32 %s1242_s12, 4  ;;  %s1246_s25 = int_to_ptr.hbm [resolvable:$true] %s1245_s25 }
 0x200   : > { %s1570_s26 = sshra.s32 %s1246_s25, 4  ;;  %s1571_s26 = int_to_ptr.hbm [resolvable:$true] %s1570_s26 }
 0x201   : > { %v1036_v51 = vsel %vm558_vm0, %v1000_v50, 0.0  ;;  %s1572_s14 = scalar_lea.hbm %s1571_s26, 128  ;;  %p1577_p1 = scmp.lt.s32.totalorder %s1571_s26, %s2221_s11 }
 0x202   : > { %1037 = vadd.xlane.f32.xlu2 %v1036_v51  ;;  %p1573_p12 = scmp.ne.s32.totalorder %s1571_s26, %s1572_s14  ;;  %p1578_p2 = scmp.lt.s32.totalorder %s1576_s18, %s1572_s14 }
 0x204   : > { %v905_v54 = vpop.f32.mrf.mxu2  ;;  %p1574_p13 = pnand %p1573_p12, %p1723_p5  ;;  %p1579_p3 = por %p1578_p2, %p1577_p1 }
 0x205   : > { %v906_v57 = vadd.f32 %v1877_v63, %v905_v54 }
 0x206   : > { %p1575_p0 = pneg %p1574_p13 }
 0x207   : > { %v1001_v59 = vmul.f32 %v1997_v55, %v906_v57  ;;  %v2089_v20 = vpop.xlane.xlu1 %978 }
 0x208   : > { %p1580_p4 = pnand %p1579_p3, %p1575_p0 }
 0x209   : > { %v1039_v60 = vsel %vm558_vm0, %v1001_v59, 0.0 }
 0x20a   : > { %1040 = vadd.xlane.f32.xlu0 %v1039_v60 }
 0x20c   : > { %v908_v62 = vpop.f32.mrf.mxu2 }
 0x20d   : > { %v909_v1 = vadd.f32 %v1877_v63, %v908_v62 }
 0x20f   : > { %v1002_v2 = vmul.f32 %v1997_v55, %v909_v1  ;;  %v2100_v35 = vpop.xlane.xlu2 %981 }
 0x211   : > { %v1042_v4 = vsel %vm558_vm0, %v1002_v2, 0.0 }
 0x212   : > { %1043 = vadd.xlane.f32.xlu1 %v1042_v4 }
 0x214   : > { %v910_v6 = vpop.f32.mrf.mxu2 }
 0x215   : > { %v911_v9 = vadd.f32 %v1877_v63, %v910_v6 }
 0x217   : > { %v1003_v10 = vmul.f32 %v1997_v55, %v911_v9 }
 0x219   : > { %v1045_v12 = vsel %vm558_vm0, %v1003_v10, 0.0 }
 0x21a   : > { %1046 = vadd.xlane.f32.xlu2 %v1045_v12 }
 0x21c   : > { %v913_v17 = vpop.f32.mrf.mxu2 }
 0x21d   : > { %v914_v23 = vadd.f32 %v1877_v63, %v913_v17 }
 0x21f   : > { %v1004_v25 = vmul.f32 %v1997_v55, %v914_v23 }
 0x221   : > { %v1048_v29 = vsel %vm558_vm0, %v1004_v25, 0.0 }
 0x222   : > { %1049 = vadd.xlane.f32.xlu0 %v1048_v29  ;;  %1153 = vadd.xlane.f32.xlu2 %v1152_v26 }
 0x224   : > { %v915_v34 = vpop.f32.mrf.mxu2 }
 0x225   : > { %v916_v36 = vadd.f32 %v1877_v63, %v915_v34  ;;  %v1008_v39 = vpop.xlane.xlu1 %1007  ;;  %v1104_v63 = vmul.f32 %v1822_v58, %v1084_v49 }
 0x226   : > { %v1054_v41 = vadd.f32 %v1008_v39, %v940_v52 }
 0x227   : > { %v1005_v43 = vmul.f32 %v1997_v55, %v916_v36  ;;  %v2117_v55 = vpop.xlane.xlu0 %984  ;;  %v1149_v52 = vsel %vm1106_vm2, %v1104_v63, 0.0 }
 0x228   : > { %v1155_v47 = vadd.f32 %v2013_v13, %v1054_v41 }
 0x229   : > { %v1051_v18 = vsel %vm558_vm0, %v1005_v43, 0.0 }
 0x22a   : > { %v1173_v50 = vadd.f32 %v2105_v42, %v1155_v47  ;;  %1052 = vadd.xlane.f32.xlu1 %v1051_v18  ;;  %1147 = vadd.xlane.f32.xlu0 %v1146_v44 }
 0x22c   : > { %1205 = vst [vmem:[%s2114_s17] sm:$0xff] %v1173_v50 }
 0x22d   : > { %v1011_v51 = vpop.xlane.xlu2 %1010 }
 0x22e   : > { %v1055_v13 = vadd.f32 %v1011_v51, %v943_v61 }
 0x230   : > { %v1156_v54 = vadd.f32 %v2021_v21, %v1055_v13 }
 0x232   : > { %v1174_v57 = vadd.f32 %v2105_v42, %v1156_v54  ;;  %1150 = vadd.xlane.f32.xlu1 %v1149_v52 }
 0x234   : > { %1206 = vst [vmem:[%s2114_s17 + $0x8] sm:$0xff] %v1174_v57 }
 0x235   : > { %v1014_v58 = vpop.xlane.xlu0 %1013 }
 0x236   : > { %v1056_v59 = vadd.f32 %v1014_v58, %v2055_v48 }
 0x238   : > { %v1157_v60 = vadd.f32 %v2016_v15, %v1056_v59 }
 0x23a   : > { %v1175_v62 = vadd.f32 %v2105_v42, %v1157_v60 }
 0x23c   : > { %1207 = vst [vmem:[%s2114_s17 + $0x10] sm:$0xff] %v1175_v62 }
 0x23d   : > { %v1017_v1 = vpop.xlane.xlu1 %1016 }
 0x23e   : > { %v1057_v61 = vadd.f32 %v1017_v1, %v2062_v56 }
 0x240   : > { %v1158_v2 = vadd.f32 %v2023_v22, %v1057_v61 }
 0x242   : > { %v1176_v21 = vadd.f32 %v2105_v42, %v1158_v2 }
 0x244   : > { %1208 = vst [vmem:[%s2114_s17 + $0x18] sm:$0xff] %v1176_v21 }
 0x245   : > { %v1020_v4 = vpop.xlane.xlu2 %1019 }
 0x246   : > { %v1058_v6 = vadd.f32 %v1020_v4, %v2060_v53 }
 0x248   : > { %v1159_v48 = vadd.f32 %v2030_v28, %v1058_v6 }
 0x24a   : > { %v1177_v15 = vadd.f32 %v2105_v42, %v1159_v48 }
 0x24c   : > { %1209 = vst [vmem:[%s2114_s17 + $0x20] sm:$0xff] %v1177_v15 }
 0x24d   : > { %v1023_v9 = vpop.xlane.xlu0 %1022 }
 0x24e   : > { %v1059_v10 = vadd.f32 %v1023_v9, %v2067_v3 }
 0x250   : > { %v1160_v56 = vadd.f32 %v2025_v24, %v1059_v10 }
 0x252   : > { %v1178_v22 = vadd.f32 %v2105_v42, %v1160_v56 }
 0x254   : > { %1210 = vst [vmem:[%s2114_s17 + $0x28] sm:$0xff] %v1178_v22 }
 0x255   : > { %v1026_v11 = vpop.xlane.xlu1 %1025 }
 0x256   : > { %v1060_v12 = vadd.f32 %v1026_v11, %v2074_v5 }
 0x258   : > { %v1161_v53 = vadd.f32 %v2032_v30, %v1060_v12 }
 0x25a   : > { %v1179_v28 = vadd.f32 %v2105_v42, %v1161_v53 }
 0x25c   : > { %1211 = vst [vmem:[%s2114_s17 + $0x30] sm:$0xff] %v1179_v28 }
 0x25d   : > { %v1029_v14 = vpop.xlane.xlu2 %1028 }
 0x25e   : > { %v1061_v17 = vadd.f32 %v1029_v14, %v2069_v0 }
 0x260   : > { %v1162_v3 = vadd.f32 %v2040_v37, %v1061_v17 }
 0x262   : > { %v1180_v24 = vadd.f32 %v2105_v42, %v1162_v3 }
 0x264   : > { %1212 = vst [vmem:[%s2114_s17 + $0x38] sm:$0xff] %v1180_v24 }
 0x265   : > { %v1032_v23 = vpop.xlane.xlu0 %1031 }
 0x266   : > { %v1062_v25 = vadd.f32 %v1032_v23, %v2076_v7 }
 0x268   : > { %v1163_v5 = vadd.f32 %v2035_v32, %v1062_v25 }
 0x26a   : > { %v1181_v30 = vadd.f32 %v2105_v42, %v1163_v5 }
 0x26c   : > { %1213 = vst [vmem:[%s2114_s17 + $0x40] sm:$0xff] %v1181_v30 }
 0x26d   : > { %v1035_v26 = vpop.xlane.xlu1 %1034 }
 0x26e   : > { %v1063_v27 = vadd.f32 %v1035_v26, %v2085_v16 }
 0x270   : > { %v1164_v0 = vadd.f32 %v2042_v38, %v1063_v27 }
 0x272   : > { %v1182_v37 = vadd.f32 %v2105_v42, %v1164_v0 }
 0x274   : > { %1214 = vst [vmem:[%s2114_s17 + $0x48] sm:$0xff] %v1182_v37 }
 0x275   : > { %v1038_v29 = vpop.xlane.xlu2 %1037 }
 0x276   : > { %v1064_v31 = vadd.f32 %v1038_v29, %v2078_v8 }
 0x278   : > { %v1165_v7 = vadd.f32 %v2050_v45, %v1064_v31 }
 0x27a   : > { %v1183_v32 = vadd.f32 %v2105_v42, %v1165_v7 }
 0x27c   : > { %1215 = vst [vmem:[%s2114_s17 + $0x50] sm:$0xff] %v1183_v32 }
 0x27d   : > { %v1041_v34 = vpop.xlane.xlu0 %1040 }
 0x27e   : > { %v1065_v36 = vadd.f32 %v1041_v34, %v2087_v19 }
 0x280   : > { %v1166_v39 = vadd.f32 %v2045_v40, %v1065_v36 }
 0x282   : > { %v1184_v38 = vadd.f32 %v2105_v42, %v1166_v39 }
 0x284   : > { %1216 = vst [vmem:[%s2114_s17 + $0x58] sm:$0xff] %v1184_v38 }
 0x285   : > { %v1044_v16 = vpop.xlane.xlu1 %1043 }
 0x286   : > { %v1066_v41 = vadd.f32 %v1044_v16, %v2098_v33 }
 0x288   : > { %v1167_v8 = vadd.f32 %v2052_v46, %v1066_v41 }
 0x28a   : > { %v1185_v45 = vadd.f32 %v2105_v42, %v1167_v8 }
 0x28c   : > { %1217 = vst [vmem:[%s2114_s17 + $0x60] sm:$0xff] %v1185_v45 }
 0x28d   : > { %v1047_v43 = vpop.xlane.xlu2 %1046 }
 0x28e   : > { %v1067_v19 = vadd.f32 %v1047_v43, %v2089_v20 }
 0x295   : > { %v1050_v44 = vpop.xlane.xlu0 %1049  ;;  %v1154_v40 = vpop.xlane.xlu2 %1153 }
 0x296   : > { %v1068_v20 = vadd.f32 %v1050_v44, %v2100_v35 }
 0x29d   : > { %v1053_v47 = vpop.xlane.xlu1 %1052  ;;  %v1148_v49 = vpop.xlane.xlu0 %1147 }
 0x29e   : > { %v1069_v18 = vadd.f32 %v1053_v47, %v2117_v55  ;;  %v1168_v50 = vadd.f32 %v1148_v49, %v1067_v19 }
 0x2a0   : > { %v1186_v46 = vadd.f32 %v2105_v42, %v1168_v50  ;;  %v1170_v33 = vadd.f32 %v1154_v40, %v1069_v18 }
 0x2a2   : > { %1218 = vst [vmem:[%s2114_s17 + $0x68] sm:$0xff] %v1186_v46  ;;  %v1188_v63 = vadd.f32 %v2105_v42, %v1170_v33 }
 0x2a4   : > { %1220 = vst [vmem:[%s2114_s17 + $0x78] sm:$0xff] %v1188_v63 }
 0x2a5   : > { %v1151_v55 = vpop.xlane.xlu1 %1150 }
 0x2a6   : > { %v1169_v51 = vadd.f32 %v1151_v55, %v1068_v20 }
 0x2a8   : > { %v1187_v13 = vadd.f32 %v2105_v42, %v1169_v51 }
 0x2aa   : > { %1219 = vst [vmem:[%s2114_s17 + $0x70] sm:$0xff] %v1187_v13 }
 0x2ab   : > { %1583 = shalt.err (!%p1580_p4)
}
 0x2ac   : > { %s1620_s15 = smov 128   ;;  %s1621_s17 = smov 8  }
 0x2ad   : > { %1510 = dma.vmem_to_hbm [thread:$0]  (%p1723_p5), %s1244_s23, 2048, %s1246_s25, %s1227_s9, %s1620_s15, %s1620_s15, %s1621_s17  }
 0x2ae PF: > { %p1516_p7 = scmp.ge.s32.totalorder %s1618_s22, 2  ;;  %s1268_s16 = sand.u32 1, %s1606_s19  }
 0x2af   : > { %s1269_s13 = scalar_lea.sflag [#allocation4], %s1268_s16 }
 0x2b0   : > { %p1513_p8 = pnand %p1516_p7, %p1727_p6 }
 0x2b2   : > { %p1514_p9 = pneg %p1513_p8 }
 0x2b4   : > { %1601 = dma.done.wait (%p1514_p9), %s1269_s13, 2048  }
 0x2b5   : > { %1603 = vsyncadd (%p1514_p9), %s1269_s13, 4294965248  ;;  %p23_p10 = scmp.ge.s32.totalorder %s1710_s24, 4   ;;  %s2224_s19 = smov %s1610_s20 }
 0x2b6   : > { %s2225_s20 = smov %s1614_s21  ;;  %s2226_s21 = smov %s1721_s27 }
 0x2b7   : > { %s2227_s22 = smov %s1710_s24  ;;  %25 = sbr.rel (!%p23_p10) target bundleno = 5 (0x5), region = 110 }
 0x2bc   :  { %1275 = vsyncpa [#allocation4], 1 }
 0x2bd   :  { %1277 = vsyncpa [#allocation4 + $0x1], 1 }

</bundles_post_ra>
